<compile_context>
chip_gen: v6e
topology: v6e:2x2x1
jax: 0.10.0
libtpu: 0.0.40
codegen_flags: <defaults>
</compile_context>

<pallas_src>
import functools

import jax
import jax.numpy as jnp
from jax.experimental import pallas as pl
from jax.experimental.pallas import tpu as pltpu

BN_EPS = 1e-5


def _round_up(x: int, m: int) -> int:
    return ((x + m - 1) // m) * m


def _choose_tile(padded_dim: int, requested: int, min_tiles: int = 1) -> int:
    """Largest multiple of 128 that divides `padded_dim` (itself a multiple of 128),
    is <= requested, and -- when possible -- leaves at least `min_tiles` tiles
    (>= 2 channel tiles lets the 'parallel' axis use both v7x TensorCores)."""
    n = padded_dim // 128
    req = max(1, requested // 128)
    divs = [m for m in range(1, n + 1) if n % m == 0 and m <= req]
    best = max(divs) if divs else 1
    if min_tiles > 1:
        cand = [m for m in divs if n // m >= min_tiles]
        if cand:
            best = max(cand)
    return best * 128


def _vmem_limit(need_bytes: int) -> int:
    # 48 MiB cap leaves headroom for Mosaic internal scratch on v7x (64 MiB/TC
    # physical) and is conservative on v5e/v6e (128 MiB).  Never clamp below need.
    limit = min(max(need_bytes + (8 << 20), 32 << 20), 48 << 20)
    return int(max(limit, need_bytes + (2 << 20)))


# ---------------------------------------------------------------------------
# Kernel 1: tiled  y = x @ w_t  (+ per-channel sum / sum-of-squares partials)
# grid = (channel tiles j, row tiles i, k tiles k)
# ---------------------------------------------------------------------------
def _linear_stats_kernel(x_ref, w_ref, y_ref, stats_ref, acc_ref, *,
                         nk, tk, w_resident):
    i = pl.program_id(1)   # row tile
    k = pl.program_id(2)   # reduction tile

    @pl.when(k == 0)
    def _init_acc():
        acc_ref[...] = jnp.zeros_like(acc_ref)

    if w_resident:
        # w_ref holds the full (kp_in, tn) strip for this channel tile; slice
        # the current k-chunk (tile-aligned -> no relayout).
        k0 = pl.multiple_of(k * tk, tk)
        w_blk = w_ref[pl.ds(k0, tk), :]
    else:
        w_blk = w_ref[...]

    acc_ref[...] += jnp.dot(x_ref[...], w_blk,
                            preferred_element_type=jnp.float32)

    @pl.when(k == nk - 1)
    def _finalize():
        y = acc_ref[...]
        y_ref[...] = y.astype(y_ref.dtype)

        # BN batch statistics accumulated across row tiles into the resident
        # (16, tn) stats block: rows 0:8 = sum partials, rows 8:16 = sum of
        # squares.  The TM -> 8 reduction is plain VPU adds (the reshape keeps
        # the (8,128) tiling); the final 8 -> 1 sublane reduce happens outside
        # on a tiny array, keeping the XLU out of the hot loop.
        @pl.when(i == 0)
        def _init_stats():
            stats_ref[...] = jnp.zeros_like(stats_ref)

        tm, tn = y.shape
        yr = y.reshape(tm // 8, 8, tn)
        stats_ref[0:8, :] = stats_ref[0:8, :] + yr.sum(axis=0)
        stats_ref[8:16, :] = stats_ref[8:16, :] + (yr * yr).sum(axis=0)


# ---------------------------------------------------------------------------
# Kernel 2: epilogue  relu(y*scale + shift) (+ residual)
# grid = (channel tiles j, row tiles i)
# ---------------------------------------------------------------------------
def _scale_shift_relu_kernel(*refs, residual: bool):
    if residual:
        y_ref, scale_ref, shift_ref, xres_ref, o_ref = refs
    else:
        y_ref, scale_ref, shift_ref, o_ref = refs

    y = y_ref[...].astype(jnp.float32)
    y = y * scale_ref[...] + shift_ref[...]        # folded BN affine (or bias)
    y = jnp.maximum(y, 0.0)
    if residual:
        y = y + xres_ref[...].astype(jnp.float32)  # residual added after ReLU
    o_ref[...] = y.astype(o_ref.dtype)


# ---------------------------------------------------------------------------
# One-time parameter preparation (hoisted out of the hot path)
# ---------------------------------------------------------------------------
def prepare_fc_layer_params(weight, bias, gamma, beta, *, use_bn=True,
                            matmul_dtype=jnp.bfloat16, y_dtype=None,
                            out_dtype=jnp.float32,
                            tn=512, tk=512, min_channel_tiles=2,
                            max_resident_w_bytes=8 << 20):
    """weight: (k_out, k_in) PyTorch Linear convention. Pre-transposes, pads channels
    to lane-dense multiples of 128 and casts MXU operands (default bf16).
    min_channel_tiles=2 targets v7x megacore; set 1 on single-TC v5e/v6e if you want
    the largest possible tn."""
    k_out, k_in = weight.shape
    kp_out = _round_up(k_out, 128)
    kp_in = _round_up(k_in, 128)
    tn = _choose_tile(kp_out, tn, min_tiles=min_channel_tiles)
    tk = _choose_tile(kp_in, tk)

    mm_b = jnp.dtype(matmul_dtype).itemsize
    # Keep the whole (kp_in, tn) weight strip for the current channel tile resident
    # in VMEM (fetched once per channel tile, not once per row tile) whenever it is
    # small enough even double-buffered; otherwise fall back to (tk, tn) tiling.
    w_resident = kp_in * tn * mm_b <= max_resident_w_bytes

    is_bf16 = jnp.dtype(matmul_dtype) == jnp.dtype(jnp.bfloat16)
    if y_dtype is None:
        # bf16 y halves the HBM round trip between the two kernels; on v5e you may
        # pass y_dtype=jnp.bfloat16 explicitly even with f32 matmul operands.
        y_dtype = jnp.bfloat16 if is_bf16 else jnp.float32

    w_t = jnp.pad(weight.T.astype(matmul_dtype),
                  ((0, kp_in - k_in), (0, kp_out - k_out)))
    pad_c = (0, kp_out - k_out)
    return dict(
        w_t=w_t,
        bias=jnp.pad(bias.astype(jnp.float32), pad_c),
        gamma=jnp.pad(gamma.astype(jnp.float32), pad_c),
        beta=jnp.pad(beta.astype(jnp.float32), pad_c),
        k_in=k_in, k_out=k_out, kp_in=kp_in, kp_out=kp_out,
        tn=tn, tk=tk,
        use_bn=use_bn,
        residual=(k_in == k_out),
        w_resident=w_resident,
        matmul_dtype=matmul_dtype,
        y_dtype=y_dtype,
        out_dtype=out_dtype,
        # residual stream narrowed to bf16 only on the (already loose) bf16 path
        res_dtype=(jnp.bfloat16 if is_bf16 else jnp.float32),
    )


# ---------------------------------------------------------------------------
# Forward pass
# ---------------------------------------------------------------------------
def fc_layer_forward(inputs, params, *, tm=512):
    """inputs: (..., k_in) float32.  Returns (..., k_out) in params['out_dtype']."""
    k_in, k_out = params["k_in"], params["k_out"]
    kp_in, kp_out = params["kp_in"], params["kp_out"]
    tk, tn = params["tk"], params["tn"]
    md = params["matmul_dtype"]
    y_dtype = params["y_dtype"]
    out_dtype = params["out_dtype"]
    res_dtype = params["res_dtype"]
    residual = params["residual"]
    w_resident = params["w_resident"]

    orig_shape = inputs.shape
    x2d = inputs.reshape(-1, k_in)
    r = x2d.shape[0]

    tm = min(tm, _round_up(r, 8))
    rp = _round_up(r, tm)
    ni, nj, nk = rp // tm, kp_out // tn, kp_in // tk

    x_mm = jnp.pad(x2d.astype(md), ((0, rp - r), (0, kp_in - k_in)))

    mm_b = jnp.dtype(md).itemsize
    y_b = jnp.dtype(y_dtype).itemsize

    if w_resident:
        w_spec = pl.BlockSpec((kp_in, tn), lambda j, i, k: (0, j))
        w_vmem = 2 * kp_in * tn * mm_b
        w_hbm = kp_in * kp_out * mm_b              # each strip fetched once
    else:
        w_spec = pl.BlockSpec((tk, tn), lambda j, i, k: (k, j))
        w_vmem = 2 * tk * tn * mm_b
        w_hbm = ni * kp_in * kp_out * mm_b         # re-fetched once per row tile

    k1_need = (2 * tm * tk * mm_b + w_vmem + 2 * tm * tn * y_b
               + 2 * 16 * tn * 4 + tm * tn * 4)
    k1_cost = pl.CostEstimate(
        flops=2 * rp * kp_in * kp_out,
        transcendentals=0,
        bytes_accessed=int(nj * rp * kp_in * mm_b + w_hbm
                           + rp * kp_out * y_b + 16 * kp_out * 4),
    )

    y, stats = pl.pallas_call(
        functools.partial(_linear_stats_kernel, nk=nk, tk=tk,
                          w_resident=w_resident),
        grid=(nj, ni, nk),
        in_specs=[
            pl.BlockSpec((tm, tk), lambda j, i, k: (i, k)),   # x row/k tile
            w_spec,                                           # weight strip / tile
        ],
        out_specs=(
            pl.BlockSpec((tm, tn), lambda j, i, k: (i, j)),   # y tile
            pl.BlockSpec((16, tn), lambda j, i, k: (0, j)),   # stats (resident acc)
        ),
        out_shape=(
            jax.ShapeDtypeStruct((rp, kp_out), y_dtype),
            jax.ShapeDtypeStruct((16, kp_out), jnp.float32),
        ),
        scratch_shapes=[pltpu.VMEM((tm, tn), jnp.float32)],
        compiler_params=pltpu.CompilerParams(
            dimension_semantics=("parallel", "arbitrary", "arbitrary"),
            vmem_limit_bytes=_vmem_limit(k1_need),
        ),
        cost_estimate=k1_cost,
    )(x_mm, params["w_t"])

    # ---- fold BN (training-mode, biased variance) into one scale/shift per channel
    if params["use_bn"]:
        ssum = stats[0:8, :].sum(axis=0)
        ssq = stats[8:16, :].sum(axis=0)
        inv_r = 1.0 / r                            # real (un-padded) row count
        mean = ssum * inv_r
        var = jnp.maximum(ssq * inv_r - mean * mean, 0.0)
        scale = params["gamma"] * jax.lax.rsqrt(var + BN_EPS)
        shift = params["beta"] - mean * scale
    else:
        scale = jnp.ones((kp_out,), jnp.float32)
        shift = params["bias"]                     # bias only matters when BN is off
    scale = scale.reshape(1, kp_out)
    shift = shift.reshape(1, kp_out)

    # ---- epilogue (memory-bound: narrow streams where tolerable)
    ep_in = [y, scale, shift]
    ep_specs = [
        pl.BlockSpec((tm, tn), lambda j, i: (i, j)),
        pl.BlockSpec((1, tn), lambda j, i: (0, j)),
        pl.BlockSpec((1, tn), lambda j, i: (0, j)),
    ]
    res_b = 0
    if residual:
        x_res = jnp.pad(x2d.astype(res_dtype),
                        ((0, rp - r), (0, kp_out - k_out)))   # k_in == k_out
        ep_in.append(x_res)
        ep_specs.append(pl.BlockSpec((tm, tn), lambda j, i: (i, j)))
        res_b = jnp.dtype(res_dtype).itemsize

    out_b = jnp.dtype(out_dtype).itemsize
    k2_need = 2 * (tm * tn * y_b + 2 * tn * 4 + tm * tn * out_b + tm * tn * res_b)
    k2_cost = pl.CostEstimate(
        flops=3 * rp * kp_out,
        transcendentals=0,
        bytes_accessed=int(rp * kp_out * (y_b + out_b + res_b) + 2 * kp_out * 4),
    )

    out_padded = pl.pallas_call(
        functools.partial(_scale_shift_relu_kernel, residual=residual),
        grid=(nj, ni),
        in_specs=ep_specs,
        out_specs=pl.BlockSpec((tm, tn), lambda j, i: (i, j)),
        out_shape=jax.ShapeDtypeStruct((rp, kp_out), out_dtype),
        compiler_params=pltpu.CompilerParams(
            dimension_semantics=("parallel", "parallel"),
            vmem_limit_bytes=_vmem_limit(k2_need),
        ),
        cost_estimate=k2_cost,
    )(*ep_in)

    # When rp == r and kp_out == k_out this slice is a no-op; otherwise the consumer
    # can keep the padded layout to avoid this extra HBM pass over the output.
    out = out_padded[:r, :k_out]
    return out.reshape(orig_shape[:-1] + (k_out,))


# ---------------------------------------------------------------------------
# Pure-JAX reference mirroring the PyTorch module (training-mode BN), f32.
# ---------------------------------------------------------------------------
def _reference_fc_layer(inputs, weight, bias, gamma, beta, use_bn=True):
    k_out, k_in = weight.shape
    y = jnp.einsum('...i,oi->...o', inputs, weight) + bias
    if use_bn:
        y2 = y.reshape(-1, k_out)
        mean = jnp.mean(y2, axis=0, keepdims=True)
        var = jnp.mean((y2 - mean) ** 2, axis=0, keepdims=True)
        y2 = (y2 - mean) / jnp.sqrt(var + BN_EPS) * gamma + beta
        y = y2.reshape(y.shape)
    y = jnp.maximum(y, 0.0)
    if k_out == k_in:
        y = y + inputs
    return y


if __name__ == "__main__":
    key = jax.random.PRNGKey(0)
    kx, kw, kb, kg, kbe, kx2, kw2, kb2 = jax.random.split(key, 8)

    # --- Case A/B/D: (batch=2, seq=8, k_in=32) -> k_out=32 (residual exercised)
    B, L, K_IN, K_OUT = 2, 8, 32, 32
    x = jax.random.normal(kx, (B, L, K_IN), dtype=jnp.float32)
    bound = 1.0 / (K_IN ** 0.5)
    w = jax.random.uniform(kw, (K_OUT, K_IN), jnp.float32, -bound, bound)
    b = jax.random.uniform(kb, (K_OUT,), jnp.float32, -bound, bound)
    gamma = 1.0 + 0.1 * jax.random.normal(kg, (K_OUT,), jnp.float32)
    beta = 0.1 * jax.random.normal(kbe, (K_OUT,), jnp.float32)

    ref = _reference_fc_layer(x, w, b, gamma, beta, use_bn=True)

    # A: default bf16 MXU operands (loosened tolerance vs. f32 reference)
    p_bf16 = prepare_fc_layer_params(w, b, gamma, beta, use_bn=True,
                                     matmul_dtype=jnp.bfloat16)
    out_a = jax.block_until_ready(fc_layer_forward(x, p_bf16))
    assert out_a.shape == (B, L, K_OUT)
    assert jnp.allclose(out_a, ref, atol=5e-2, rtol=5e-2), "bf16 path mismatch"

    # B: f32 MXU operands (tight tolerance; test-only path — production should use bf16)
    p_f32 = prepare_fc_layer_params(w, b, gamma, beta, use_bn=True,
                                    matmul_dtype=jnp.float32)
    out_b = jax.block_until_ready(fc_layer_forward(x, p_f32))
    assert jnp.allclose(out_b, ref, atol=1e-4, rtol=1e-4), "f32 path mismatch"

    # C: non-square (k_out != k_in), odd row count -> exercises row/channel padding
    B2, L2, K_IN2, K_OUT2 = 2, 7, 32, 48
    x2 = jax.random.normal(kx2, (B2, L2, K_IN2), dtype=jnp.float32)
    bound2 = 1.0 / (K_IN2 ** 0.5)
    w2 = jax.random.uniform(kw2, (K_OUT2, K_IN2), jnp.float32, -bound2, bound2)
    b2 = jax.random.uniform(kb2, (K_OUT2,), jnp.float32, -bound2, bound2)
    gamma2 = jnp.ones((K_OUT2,), jnp.float32)
    beta2 = jnp.zeros((K_OUT2,), jnp.float32)
    p_c = prepare_fc_layer_params(w2, b2, gamma2, beta2, use_bn=True,
                                  matmul_dtype=jnp.float32)
    out_c = jax.block_until_ready(fc_layer_forward(x2, p_c))
    ref_c = _reference_fc_layer(x2, w2, b2, gamma2, beta2, use_bn=True)
    assert out_c.shape == (B2, L2, K_OUT2)
    assert jnp.allclose(out_c, ref_c, atol=1e-4, rtol=1e-4), "padded case mismatch"

    # D: use_bn=False (bias folded into the epilogue shift), residual
    p_d = prepare_fc_layer_params(w, b, gamma, beta, use_bn=False,
                                  matmul_dtype=jnp.float32)
    out_d = jax.block_until_ready(fc_layer_forward(x, p_d))
    ref_d = _reference_fc_layer(x, w, b, gamma, beta, use_bn=False)
    assert jnp.allclose(out_d, ref_d, atol=1e-4, rtol=1e-4), "no-BN path mismatch"

    print("KERNEL_OK")
</pallas_src>

<mosaic_0001>
module attributes {stable_mosaic.version = 11 : i64} {
  func.func @_linear_stats_kernel(%arg0: i32, %arg1: i32, %arg2: i32, %arg3: memref<16x128xbf16, #tpu.memory_space<vmem>>, %arg4: memref<128x128xbf16, #tpu.memory_space<vmem>>, %arg5: memref<16x128xbf16, #tpu.memory_space<vmem>>, %arg6: memref<16x128xf32, #tpu.memory_space<vmem>>, %arg7: memref<16x128xf32, #tpu.memory_space<vmem>>) attributes {dimension_semantics = [#tpu.dimension_semantics<parallel>, #tpu.dimension_semantics<arbitrary>, #tpu.dimension_semantics<arbitrary>], iteration_bounds = array<i64: 1, 1, 1>, scalar_prefetch = 0 : i64, scratch_operands = 1 : i64, tpu.core_type = #tpu.core_type<tc>, window_params = [{transform_indices = @transform_0, window_bounds = array<i64: 16, 128>}, {transform_indices = @transform_1, window_bounds = array<i64: 128, 128>}, {transform_indices = @transform_2, window_bounds = array<i64: 16, 128>}, {transform_indices = @transform_3, window_bounds = array<i64: 16, 128>}]} {
    %c0_i32 = arith.constant 0 : i32
    %0 = arith.cmpi eq, %arg2, %c0_i32 : i32
    %1 = arith.extui %0 : i1 to i32
    %c0_i32_0 = arith.constant 0 : i32
    %2 = arith.cmpi ne, %1, %c0_i32_0 : i32
    scf.if %2 {
      %cst_9 = arith.constant 0.000000e+00 : f32
      %15 = vector.broadcast %cst_9 : f32 to vector<16x128xf32>
      %c0_10 = arith.constant 0 : index
      %c0_11 = arith.constant 0 : index
      %16 = vector.load %arg7[%c0_10, %c0_11] : memref<16x128xf32, #tpu.memory_space<vmem>>, vector<16x128xf32>
      tpu.vector_store %arg7[%c0_10, %c0_11], %15 {strides = array<i32>} : memref<16x128xf32, #tpu.memory_space<vmem>>, vector<16x128xf32>,
    } else {
    }
    %c128_i32 = arith.constant 128 : i32
    %3 = arith.muli %arg2, %c128_i32 : i32
    %4 = tpu.assume_multiple %3, 128 : i32
    %5 = arith.index_cast %4 : i32 to index
    %c0 = arith.constant 0 : index
    %6 = vector.load %arg4[%5, %c0] : memref<128x128xbf16, #tpu.memory_space<vmem>>, vector<128x128xbf16>
    %c0_1 = arith.constant 0 : index
    %c0_2 = arith.constant 0 : index
    %7 = vector.load %arg7[%c0_1, %c0_2] : memref<16x128xf32, #tpu.memory_space<vmem>>, vector<16x128xf32>
    %c0_3 = arith.constant 0 : index
    %c0_4 = arith.constant 0 : index
    %8 = vector.load %arg3[%c0_3, %c0_4] : memref<16x128xbf16, #tpu.memory_space<vmem>>, vector<16x128xbf16>
    %cst = arith.constant dense<0.000000e+00> : vector<16x128xf32>
    %9 = tpu.matmul %8, %6, %cst {dimension_numbers = #tpu.dot_dimension_numbers<[1], [0], [0], [1], [0, 0, 1, 1], [], []>} : vector<16x128xbf16>, vector<128x128xbf16>, vector<16x128xf32> -> vector<16x128xf32>
    %10 = arith.addf %7, %9 : vector<16x128xf32>
    %c0_5 = arith.constant 0 : index
    %c0_6 = arith.constant 0 : index
    %11 = vector.load %arg7[%c0_5, %c0_6] : memref<16x128xf32, #tpu.memory_space<vmem>>, vector<16x128xf32>
    tpu.vector_store %arg7[%c0_5, %c0_6], %10 {strides = array<i32>} : memref<16x128xf32, #tpu.memory_space<vmem>>, vector<16x128xf32>,
    %c0_i32_7 = arith.constant 0 : i32
    %12 = arith.cmpi eq, %arg2, %c0_i32_7 : i32
    %13 = arith.extui %12 : i1 to i32
    %c0_i32_8 = arith.constant 0 : i32
    %14 = arith.cmpi ne, %13, %c0_i32_8 : i32
    scf.if %14 {
      %c0_9 = arith.constant 0 : index
      %c0_10 = arith.constant 0 : index
      %15 = vector.load %arg7[%c0_9, %c0_10] : memref<16x128xf32, #tpu.memory_space<vmem>>, vector<16x128xf32>
      %16 = arith.truncf %15 : vector<16x128xf32> to vector<16x128xbf16>
      %c0_11 = arith.constant 0 : index
      %c0_12 = arith.constant 0 : index
      %17 = vector.load %arg5[%c0_11, %c0_12] : memref<16x128xbf16, #tpu.memory_space<vmem>>, vector<16x128xbf16>
      tpu.vector_store %arg5[%c0_11, %c0_12], %16 {strides = array<i32>} : memref<16x128xbf16, #tpu.memory_space<vmem>>, vector<16x128xbf16>,
      %c0_i32_13 = arith.constant 0 : i32
      %18 = arith.cmpi eq, %arg1, %c0_i32_13 : i32
      %19 = arith.extui %18 : i1 to i32
      %c0_i32_14 = arith.constant 0 : i32
      %20 = arith.cmpi ne, %19, %c0_i32_14 : i32
      scf.if %20 {
        %cst_24 = arith.constant 0.000000e+00 : f32
        %31 = vector.broadcast %cst_24 : f32 to vector<16x128xf32>
        %c0_25 = arith.constant 0 : index
        %c0_26 = arith.constant 0 : index
        %32 = vector.load %arg6[%c0_25, %c0_26] : memref<16x128xf32, #tpu.memory_space<vmem>>, vector<16x128xf32>
        tpu.vector_store %arg6[%c0_25, %c0_26], %31 {strides = array<i32>} : memref<16x128xf32, #tpu.memory_space<vmem>>, vector<16x128xf32>,
      } else {
      }
      %21 = vector.shape_cast %15 : vector<16x128xf32> to vector<2x8x128xf32>
      %c0_15 = arith.constant 0 : index
      %c0_16 = arith.constant 0 : index
      %22 = vector.load %arg6[%c0_15, %c0_16] : memref<16x128xf32, #tpu.memory_space<vmem>>, vector<8x128xf32>
      %cst_17 = arith.constant dense<0.000000e+00> : vector<8x128xf32>
      %23 = vector.multi_reduction <add>, %21, %cst_17 [0] : vector<2x8x128xf32> to vector<8x128xf32>
      %24 = arith.addf %22, %23 : vector<8x128xf32>
      %c0_18 = arith.constant 0 : index
      %c0_19 = arith.constant 0 : index
      %25 = vector.load %arg6[%c0_18, %c0_19] : memref<16x128xf32, #tpu.memory_space<vmem>>, vector<8x128xf32>
      tpu.vector_store %arg6[%c0_18, %c0_19], %24 {strides = array<i32>} : memref<16x128xf32, #tpu.memory_space<vmem>>, vector<8x128xf32>,
      %c8 = arith.constant 8 : index
      %c0_20 = arith.constant 0 : index
      %26 = vector.load %arg6[%c8, %c0_20] : memref<16x128xf32, #tpu.memory_space<vmem>>, vector<8x128xf32>
      %27 = arith.mulf %21, %21 : vector<2x8x128xf32>
      %cst_21 = arith.constant dense<0.000000e+00> : vector<8x128xf32>
      %28 = vector.multi_reduction <add>, %27, %cst_21 [0] : vector<2x8x128xf32> to vector<8x128xf32>
      %29 = arith.addf %26, %28 : vector<8x128xf32>
      %c8_22 = arith.constant 8 : index
      %c0_23 = arith.constant 0 : index
      %30 = vector.load %arg6[%c8_22, %c0_23] : memref<16x128xf32, #tpu.memory_space<vmem>>, vector<8x128xf32>
      tpu.vector_store %arg6[%c8_22, %c0_23], %29 {strides = array<i32>} : memref<16x128xf32, #tpu.memory_space<vmem>>, vector<8x128xf32>,
    } else {
    }
    return
  }
  func.func @transform_0(%arg0: i32, %arg1: i32, %arg2: i32) -> (i32, i32) {
    %c0_i32 = arith.constant 0 : i32
    return %arg1, %arg2 : i32, i32
  }
  func.func @transform_1(%arg0: i32, %arg1: i32, %arg2: i32) -> (i32, i32) {
    %c0_i32 = arith.constant 0 : i32
    %c0_i32_0 = arith.constant 0 : i32
    return %c0_i32, %arg0 : i32, i32
  }
  func.func @transform_2(%arg0: i32, %arg1: i32, %arg2: i32) -> (i32, i32) {
    %c0_i32 = arith.constant 0 : i32
    return %arg1, %arg0 : i32, i32
  }
  func.func @transform_3(%arg0: i32, %arg1: i32, %arg2: i32) -> (i32, i32) {
    %c0_i32 = arith.constant 0 : i32
    %c0_i32_0 = arith.constant 0 : i32
    return %c0_i32, %arg0 : i32, i32
  }
}

</mosaic_0001>

<bundles_post_ra>
// kernel: tpu_custom_call.1
= control target key start
LH: loop header
LB: loop body
LE: loop exit
PB: predicated region body
PF: predicated region fallthrough
CT: control target
= control target key end

     0   :  { %9 = vsyncpa [#allocation4], 0  ;;  %s446_s0 = inlined_call_operand.hbm [shape: bf16[16,128], index: 0, kind: input, shape index: {}]   ;;  %s447_s1 = inlined_call_operand.hbm [shape: bf16[128,128], index: 1, kind: input, shape index: {}]   ;;  %s448_s2 = inlined_call_operand.hbm [shape: bf16[16,128], index: 2, kind: output, shape index: {0}]   ;;  %s449_s3 = inlined_call_operand.hbm [shape: f32[16,128], index: 3, kind: output, shape index: {1}]  }
   0x1   :  { %10 = vsyncpa [#allocation7], 0 }
   0x2   :  { %11 = vsyncpa [#allocation5], 0 }
   0x3   :  { %12 = vsyncpa [#allocation10], 0  ;;  %s395_s12 = smov [#allocation3]  }
   0x4   :  { %s18_s13 = sshll.u32 %s395_s12, 4  ;;  %s19_s13 = int_to_ptr.vmem [resolvable:$true] %s18_s13 }
   0x5   :  { %s315_s14 = scalar_lea.vmem %s19_s13, 128  ;;  %p320_p1 = scmp.lt.s32.totalorder %s19_s13, %s19_s13 }
   0x6   :  { %p316_p0 = scmp.ne.s32.totalorder %s19_s13, %s315_s14  ;;  %p321_p2 = scmp.lt.s32.totalorder %s315_s14, %s315_s14 }
   0x8   :  { %p322_p3 = por %p321_p2, %p320_p1 }
   0xa   :  { %p323_p4 = pnand %p322_p3, %p316_p0 }
   0xc   :  { %326 = shalt.err (!%p323_p4)
}
   0xd   :  { %s396_s15 = smov 64   ;;  %s397_s16 = smov 4  }
   0xe   :  { %24 = dma.hbm_to_vmem [thread:$0]  %s446_s0, 128, %s19_s13, [#allocation4], %s396_s15, %s396_s15, %s397_s16  }
   0xf   :  { %s398_s19 = smov [#allocation6]  }
  0x10   :  { %s30_s20 = sshll.u32 %s398_s19, 4  ;;  %s31_s20 = int_to_ptr.vmem [resolvable:$true] %s30_s20 }
  0x11   :  { %s335_s21 = scalar_lea.vmem %s31_s20, 1024  ;;  %p340_p6 = scmp.lt.s32.totalorder %s31_s20, %s31_s20 }
  0x12   :  { %p336_p5 = scmp.ne.s32.totalorder %s31_s20, %s335_s21  ;;  %p341_p7 = scmp.lt.s32.totalorder %s335_s21, %s335_s21 }
  0x14   :  { %p342_p8 = por %p341_p7, %p340_p6 }
  0x16   :  { %p343_p9 = pnand %p342_p8, %p336_p5 }
  0x18   :  { %346 = shalt.err (!%p343_p9)
}
  0x19   :  { %36 = dma.hbm_to_vmem [thread:$0]  %s447_s1, 1024, %s31_s20, [#allocation7], %s396_s15, %s396_s15, %s397_s16  }
  0x1a   :  { %387 = dma.done.wait [#allocation4], 128  }
  0x1b   :  { %388 = vsyncadd [#allocation4], 4294967168 }
  0x1c   :  { %389 = dma.done.wait [#allocation7], 1024  }
  0x1d   :  { %390 = vsyncadd [#allocation7], 4294966272  ;;  %v399_v0 = vmov 0.0   ;;  %vm400_vm0 = vmmov 0   ;;  %v298_v1 = vld [vmem:[#allocation6 + $0x38] sm:$0xff]   ;;  %v299_v2 = vld [vmem:[#allocation6 + $0x30] sm:$0xff]  }
  0x1e   :  { %268 = vmatprep.subr.bf16.mxu0 %v399_v0  ;;  %284 = vmatprep.mubr.msk.bf16.mxu0 %vm400_vm0, %v399_v0  ;;  %v300_v3 = vld [vmem:[#allocation6 + $0x28] sm:$0xff]   ;;  %v301_v4 = vld [vmem:[#allocation6 + $0x20] sm:$0xff]   ;;  %v302_v5 = vld [vmem:[#allocation6 + $0x18] sm:$0xff]   ;;  %s401_s0 = smov [#allocation8]   ;;  %s402_s24 = smov [#allocation9]  }
  0x1f   :  { %269 = vmatpush3.bf16.msra.mxu0 %v298_v1  ;;  %v303_v6 = vld [vmem:[#allocation6 + $0x10] sm:$0xff]   ;;  %v304_v7 = vld [vmem:[#allocation6 + $0x8] sm:$0xff]   ;;  %v305_v8 = vld [vmem:[#allocation6] sm:$0xff]   ;;  %s210_s1 = sshll.u32 %s401_s0, 4  ;;  %s222_s25 = sshll.u32 %s402_s24, 4  ;;  %s211_s1 = int_to_ptr.vmem [resolvable:$true] %s210_s1  ;;  %s223_s25 = int_to_ptr.vmem [resolvable:$true] %s222_s25 }
  0x20   :  { %270 = vmatprep.subr.bf16.mxu0 %v399_v0  ;;  %v306_v9 = vld [vmem:[#allocation3] sm:$0xff]   ;;  %s347_s26 = scalar_lea.vmem %s211_s1, 128  ;;  %p352_p11 = scmp.lt.s32.totalorder %s211_s1, %s211_s1 }
  0x21   :  { %p348_p10 = scmp.ne.s32.totalorder %s211_s1, %s347_s26  ;;  %p353_p12 = scmp.lt.s32.totalorder %s347_s26, %s347_s26 }
  0x23   :  { %271 = vmatpush3.bf16.msra.mxu0 %v299_v2  ;;  %p354_p13 = por %p353_p12, %p352_p11 }
  0x24   :  { %272 = vmatprep.subr.bf16.mxu0 %v399_v0 }
  0x25   :  { %p355_p0 = pnand %p354_p13, %p348_p10 }
  0x27   :  { %273 = vmatpush3.bf16.msra.mxu0 %v300_v3 }
  0x28   :  { %274 = vmatprep.subr.bf16.mxu0 %v399_v0 }
  0x2b   :  { %275 = vmatpush3.bf16.msra.mxu0 %v301_v4 }
  0x2c   :  { %276 = vmatprep.subr.bf16.mxu0 %v399_v0 }
  0x2f   :  { %277 = vmatpush3.bf16.msra.mxu0 %v302_v5 }
  0x30   :  { %278 = vmatprep.subr.bf16.mxu0 %v399_v0 }
  0x33   :  { %279 = vmatpush3.bf16.msra.mxu0 %v303_v6 }
  0x34   :  { %280 = vmatprep.subr.bf16.mxu0 %v399_v0 }
  0x37   :  { %281 = vmatpush3.bf16.msra.mxu0 %v304_v7 }
  0x38   :  { %282 = vmatprep.subr.bf16.mxu0 %v399_v0 }
  0x3b   :  { %283 = vmatpush3.bf16.msra.mxu0 %v305_v8 }
  0x3e   :  { %285 = vmatmul.mubr.bf16.vlgmr.msra.gmra.mxu0 %v306_v9 }
  0xfe   :  { %v163_v10 = vpop.f32.mrf.mxu0 }
  0xff   :  { %v200_v13 = vmul.f32 %v163_v10, %v163_v10 }
 0x100   :  { %v286_v11 = vpop.f32.mrf.mxu0 }
 0x102   :  { %v166_v12 = vpop.f32.mrf.mxu0 }
 0x103   :  { %v257_v14 = vpack.c.bf16 %v166_v12, %v163_v10  ;;  %v196_v15 = vadd.f32 %v166_v12, %v163_v10  ;;  %v201_v16 = vmul.f32 %v166_v12, %v166_v12 }
 0x104   :  { %v287_v17 = vpop.f32.mrf.mxu0 }
 0x105   :  { %v202_v18 = vadd.f32 %v201_v16, %v200_v13  ;;  %258 = vst [vmem:[#allocation8] sm:$0xff] %v257_v14  }
 0x106   :  { %358 = shalt.err (!%p355_p0)
}
 0x107   :  { %216 = dma.vmem_to_hbm [thread:$0]  %s211_s1, 128, %s448_s2, [#allocation5], %s396_s15, %s396_s15, %s397_s16   ;;  %198 = vst [vmem:[#allocation9] sm:$0xff] %v196_v15  ;;  %204 = vst [vmem:[#allocation9 + $0x8] sm:$0xff] %v202_v18 }
 0x108   :  { %s367_s29 = scalar_lea.vmem %s223_s25, 256  ;;  %p372_p2 = scmp.lt.s32.totalorder %s223_s25, %s223_s25 }
 0x109   :  { %p368_p1 = scmp.ne.s32.totalorder %s223_s25, %s367_s29  ;;  %p373_p3 = scmp.lt.s32.totalorder %s367_s29, %s367_s29 }
 0x10b   :  { %p374_p4 = por %p373_p3, %p372_p2 }
 0x10d   :  { %p375_p5 = pnand %p374_p4, %p368_p1 }
 0x10f   :  { %378 = shalt.err (!%p375_p5)
}
 0x110   :  { %s403_s30 = smov 128   ;;  %s404_s4 = smov 8  }
 0x111   :  { %228 = dma.vmem_to_hbm [thread:$0]  %s223_s25, 256, %s449_s3, [#allocation10], %s403_s30, %s403_s30, %s404_s4  }
 0x112   :  { %391 = dma.done.wait [#allocation5], 128  }
 0x113   :  { %392 = vsyncadd [#allocation5], 4294967168 }
 0x114   :  { %393 = dma.done.wait [#allocation10], 256  }
 0x115   :  { %394 = vsyncadd [#allocation10], 4294967040 }
 0x116   :  { %235 = vsyncpa [#allocation4], 1 }
 0x117   :  { %236 = vsyncpa [#allocation7], 1 }
 0x118   :  { %237 = vsyncpa [#allocation5], 1 }
 0x119   :  { %238 = vsyncpa [#allocation10], 1 }

</bundles_post_ra>
